<compile_context>
chip_gen: v5e
topology: v5e:2x2
jax: 0.10.0
libtpu: 0.0.40
codegen_flags: <defaults>
</compile_context>

<pallas_src>
import string

import numpy as np
import jax
import jax.numpy as jnp
from jax.experimental import pallas as pl
from jax.experimental.pallas import tpu as pltpu


def _packed_embed_kernel(idx_ref, w_ref, out_ref):
    """One grid tile.

    idx_ref : (TR, pack)        int32  token ids (pack tokens per output row)
    w_ref   : (pack*V, pack*D)  f32    block-diagonal replicated embedding table
    out_ref : (TR, pack*D)      f32    lane-dense packed embeddings
    """
    TR, pack = idx_ref.shape
    KV = w_ref.shape[0]
    V = KV // pack
    iota = jax.lax.broadcasted_iota(jnp.int32, (TR, KV), 1)
    onehot = jnp.zeros((TR, KV), dtype=jnp.float32)
    for j in range(pack):  # unrolled at trace time (pack is small, e.g. 4)
        onehot = onehot + (iota == (idx_ref[:, j:j + 1] + j * V)).astype(jnp.float32)
    out_ref[...] = jnp.dot(onehot, w_ref[...], preferred_element_type=jnp.float32)


def embed_pallas(packed_tokens, weight, *, max_tile_rows=512):
    """packed_tokens: (P,) int ids; weight: (V, D) f32 -> (P, D) f32 embeddings."""
    P = int(packed_tokens.shape[0])
    V, D = weight.shape

    # Pack `pack` tokens per 128-lane output row when D divides 128 (lane-dense
    # stores); otherwise fall back to one token per row.
    pack = 128 // D if (D < 128 and 128 % D == 0) else 1

    R = -(-P // pack)                                   # packed rows needed
    TR = min(max_tile_rows, max(8, -(-R // 8) * 8))     # tile rows, multiple of 8
    R_pad = -(-R // TR) * TR                            # uniform grid tiles
    P_pad = R_pad * pack

    ids = jnp.pad(packed_tokens.astype(jnp.int32), (0, P_pad - P))  # pad id 0
    ids = ids.reshape(R_pad, pack)

    # Block-diagonal replicated table (pack*V, pack*D); tiny, VMEM-resident.
    w_pack = jnp.kron(jnp.eye(pack, dtype=weight.dtype), weight)

    out = pl.pallas_call(
        _packed_embed_kernel,
        out_shape=jax.ShapeDtypeStruct((R_pad, pack * D), jnp.float32),
        grid=(R_pad // TR,),
        in_specs=[
            pl.BlockSpec((TR, pack), lambda i: (i, 0)),
            pl.BlockSpec((pack * V, pack * D), lambda i: (0, 0)),  # DMA'd once
        ],
        out_specs=pl.BlockSpec((TR, pack * D), lambda i: (i, 0)),
        compiler_params=pltpu.CompilerParams(
            dimension_semantics=("parallel",),
            vmem_limit_bytes=32 * 1024 * 1024,
        ),
    )(ids, w_pack)

    # Row-major (R_pad, pack*D) reinterprets as (R_pad*pack, D) for free; drop pad.
    return out.reshape(P_pad, D)[:P]


def character_embedding_forward(X, L, weight, batch_first=True):
    """Mirror of CharacterEmbedding.forward.

    X: (B, T) int32 token ids (or (T, B) if batch_first=False)
    L: host-known lengths, sorted descending (enforce_sorted=True semantics)
    weight: (V, D) f32 embedding table with row 0 == 0 (padding_idx=0)

    Returns (packed_data (sum(L), D) f32, batch_sizes (Tmax,) int64 numpy),
    i.e. the fields of torch's PackedSequence.
    """
    if not batch_first:
        X = X.T
    L = np.asarray(L)
    assert np.all(np.diff(L) <= 0), "lengths must be sorted descending"
    B, T = X.shape
    Tmax = int(L[0])

    # pack_padded_sequence bookkeeping: pure host-side index arithmetic.
    batch_sizes = np.array([int(np.sum(L > t)) for t in range(Tmax)], dtype=np.int64)
    gather_idx = np.concatenate(
        [np.arange(batch_sizes[t]) * T + t for t in range(Tmax)]
    ).astype(np.int32)

    # Token ids in packed (time-major) order; the kernel embeds them directly
    # into the packed data tensor.
    # TODO(synk): fuse this gather into the kernel via PrefetchScalarGridSpec
    # (scalar-prefetched per-tile gather indices) to drop the extra XLA take.
    packed_tokens = jnp.take(X.reshape(-1), jnp.asarray(gather_idx))

    data = embed_pallas(packed_tokens, weight)
    return data, batch_sizes


if __name__ == "__main__":
    # Small, deterministic setup consistent with the module's __init__.
    vocab = list(string.printable[:64])   # len(vocab) = 64
    V = len(vocab)
    D = 32                                # embedding_dim
    B, T = 2, 8

    key = jax.random.PRNGKey(0)
    kw, kx = jax.random.split(key)

    # nn.Embedding(len(vocab), D, padding_idx=0): row 0 forced to zero.
    weight = jax.random.normal(kw, (V, D), dtype=jnp.float32)
    weight = weight.at[0].set(0.0)

    L = np.array([8, 5])                  # sorted descending (pack requirement)
    X = jax.random.randint(kx, (B, T), 1, V, dtype=jnp.int32)
    valid = jnp.asarray(np.arange(T)[None, :] < L[:, None])
    X = jnp.where(valid, X, 0)            # positions past length hold pad id 0

    data, batch_sizes = character_embedding_forward(X, L, weight, batch_first=True)
    data = jax.block_until_ready(data)

    # Pure-JAX reference of embed + pack_padded_sequence ordering.
    emb_ref = jnp.take(weight, X, axis=0)                 # (B, T, D)
    ref_rows = [emb_ref[b, t]
                for t in range(int(L[0]))
                for b in range(int(np.sum(L > t)))]
    ref = jnp.stack(ref_rows)

    assert data.shape == (int(np.sum(L)), D)
    assert batch_sizes.dtype == np.int64
    assert np.array_equal(batch_sizes,
                          np.array([int(np.sum(L > t)) for t in range(int(L[0]))]))
    np.testing.assert_allclose(np.asarray(data), np.asarray(ref),
                               rtol=1e-6, atol=1e-6)

    print("KERNEL_OK")
</pallas_src>

<mosaic_0001>
module attributes {stable_mosaic.version = 11 : i64} {
  func.func @_packed_embed_kernel(%arg0: i32, %arg1: memref<8x4xi32, #tpu.memory_space<vmem>>, %arg2: memref<256x128xf32, #tpu.memory_space<vmem>>, %arg3: memref<8x128xf32, #tpu.memory_space<vmem>>) attributes {dimension_semantics = [#tpu.dimension_semantics<parallel>], iteration_bounds = array<i64: 1>, scalar_prefetch = 0 : i64, scratch_operands = 0 : i64, tpu.core_type = #tpu.core_type<tc>, window_params = [{transform_indices = @transform_0, window_bounds = array<i64: 8, 4>}, {pipeline_mode = #tpu.pipeline_mode<synchronous>, transform_indices = @transform_1, window_bounds = array<i64: 256, 128>}, {transform_indices = @transform_2, window_bounds = array<i64: 8, 128>}]} {
    %0 = tpu.iota {dimensions = array<i32: 1>} : vector<8x256xi32>
    %cst = arith.constant 0.000000e+00 : f32
    %1 = vector.broadcast %cst : f32 to vector<8x256xf32>
    %c0 = arith.constant 0 : index
    %c0_0 = arith.constant 0 : index
    %2 = vector.load %arg1[%c0, %c0_0] : memref<8x4xi32, #tpu.memory_space<vmem>>, vector<8x1xi32>
    %c0_i32 = arith.constant 0 : i32
    %3 = vector.broadcast %c0_i32 : i32 to vector<8x1xi32>
    %4 = arith.addi %2, %3 : vector<8x1xi32>
    %5 = vector.broadcast %4 : vector<8x1xi32> to vector<8x256xi32>
    %6 = arith.cmpi eq, %0, %5 : vector<8x256xi32>
    %7 = arith.extui %6 : vector<8x256xi1> to vector<8x256xi32>
    %8 = arith.sitofp %7 : vector<8x256xi32> to vector<8x256xf32>
    %9 = arith.addf %1, %8 : vector<8x256xf32>
    %c0_1 = arith.constant 0 : index
    %c1 = arith.constant 1 : index
    %10 = vector.load %arg1[%c0_1, %c1] : memref<8x4xi32, #tpu.memory_space<vmem>>, vector<8x1xi32>
    %c64_i32 = arith.constant 64 : i32
    %11 = vector.broadcast %c64_i32 : i32 to vector<8x1xi32>
    %12 = arith.addi %10, %11 : vector<8x1xi32>
    %13 = vector.broadcast %12 : vector<8x1xi32> to vector<8x256xi32>
    %14 = arith.cmpi eq, %0, %13 : vector<8x256xi32>
    %15 = arith.extui %14 : vector<8x256xi1> to vector<8x256xi32>
    %16 = arith.sitofp %15 : vector<8x256xi32> to vector<8x256xf32>
    %17 = arith.addf %9, %16 : vector<8x256xf32>
    %c0_2 = arith.constant 0 : index
    %c2 = arith.constant 2 : index
    %18 = vector.load %arg1[%c0_2, %c2] : memref<8x4xi32, #tpu.memory_space<vmem>>, vector<8x1xi32>
    %c128_i32 = arith.constant 128 : i32
    %19 = vector.broadcast %c128_i32 : i32 to vector<8x1xi32>
    %20 = arith.addi %18, %19 : vector<8x1xi32>
    %21 = vector.broadcast %20 : vector<8x1xi32> to vector<8x256xi32>
    %22 = arith.cmpi eq, %0, %21 : vector<8x256xi32>
    %23 = arith.extui %22 : vector<8x256xi1> to vector<8x256xi32>
    %24 = arith.sitofp %23 : vector<8x256xi32> to vector<8x256xf32>
    %25 = arith.addf %17, %24 : vector<8x256xf32>
    %c0_3 = arith.constant 0 : index
    %c3 = arith.constant 3 : index
    %26 = vector.load %arg1[%c0_3, %c3] : memref<8x4xi32, #tpu.memory_space<vmem>>, vector<8x1xi32>
    %c192_i32 = arith.constant 192 : i32
    %27 = vector.broadcast %c192_i32 : i32 to vector<8x1xi32>
    %28 = arith.addi %26, %27 : vector<8x1xi32>
    %29 = vector.broadcast %28 : vector<8x1xi32> to vector<8x256xi32>
    %30 = arith.cmpi eq, %0, %29 : vector<8x256xi32>
    %31 = arith.extui %30 : vector<8x256xi1> to vector<8x256xi32>
    %32 = arith.sitofp %31 : vector<8x256xi32> to vector<8x256xf32>
    %33 = arith.addf %25, %32 : vector<8x256xf32>
    %c0_4 = arith.constant 0 : index
    %c0_5 = arith.constant 0 : index
    %34 = vector.load %arg2[%c0_4, %c0_5] : memref<256x128xf32, #tpu.memory_space<vmem>>, vector<256x128xf32>
    %cst_6 = arith.constant dense<0.000000e+00> : vector<8x128xf32>
    %35 = tpu.matmul %33, %34, %cst_6 {dimension_numbers = #tpu.dot_dimension_numbers<[1], [0], [0], [1], [0, 0, 1, 1], [], []>} : vector<8x256xf32>, vector<256x128xf32>, vector<8x128xf32> -> vector<8x128xf32>
    %c0_7 = arith.constant 0 : index
    %c0_8 = arith.constant 0 : index
    %36 = vector.load %arg3[%c0_7, %c0_8] : memref<8x128xf32, #tpu.memory_space<vmem>>, vector<8x128xf32>
    tpu.vector_store %arg3[%c0_7, %c0_8], %35 {strides = array<i32>} : memref<8x128xf32, #tpu.memory_space<vmem>>, vector<8x128xf32>,
    return
  }
  func.func @transform_0(%arg0: i32) -> (i32, i32) {
    %c0_i32 = arith.constant 0 : i32
    %c0_i32_0 = arith.constant 0 : i32
    return %arg0, %c0_i32 : i32, i32
  }
  func.func @transform_1(%arg0: i32) -> (i32, i32) {
    %c0_i32 = arith.constant 0 : i32
    %c0_i32_0 = arith.constant 0 : i32
    %c0_i32_1 = arith.constant 0 : i32
    return %c0_i32, %c0_i32_0 : i32, i32
  }
  func.func @transform_2(%arg0: i32) -> (i32, i32) {
    %c0_i32 = arith.constant 0 : i32
    %c0_i32_0 = arith.constant 0 : i32
    return %arg0, %c0_i32 : i32, i32
  }
}

</mosaic_0001>

<bundles_post_ra>
// kernel: tpu_custom_call.1
= control target key start
LH: loop header
LB: loop body
LE: loop exit
PB: predicated region body
PF: predicated region fallthrough
CT: control target
= control target key end

     0   :  { %7 = vsyncpa [#allocation3], 0  ;;  %s276_s0 = inlined_call_operand.vmem [shape: s32[8,4], index: 0, kind: input, shape index: {}]   ;;  %s277_s1 = inlined_call_operand.hbm [shape: f32[256,128], index: 1, kind: input, shape index: {}]   ;;  %s278_s2 = inlined_call_operand.hbm [shape: f32[8,128], index: 2, kind: output, shape index: {}]  }
   0x1   :  { %8 = vsyncpa [#allocation4], 0  ;;  %s15_s11 = sshll.u32 %s277_s1, 4  ;;  %s243_s12 = smov [#allocation2]   ;;  %s16_s11 = int_to_ptr.hbm [resolvable:$true] %s15_s11 }
   0x2   :  { %s17_s13 = sshll.u32 %s243_s12, 4  ;;  %s244_s14 = smov 128   ;;  %s18_s13 = int_to_ptr.vmem [resolvable:$true] %s17_s13 }
   0x3   :  { %s245_s15 = smov 8  }
   0x4   :  { %23 = dma.hbm_to_vmem [thread:$0]  %s16_s11, 4096, %s18_s13, [#allocation3], %s244_s14, %s244_s14, %s245_s15  }
   0x5   :  { %239 = dma.done.wait [#allocation3], 4096  }
   0x6   :  { %240 = vsyncadd [#allocation3], 4294963200  ;;  %v246_v0 = vmov 0   ;;  %v247_v1 = vmov 2   ;;  %v31_v2 = vld [vmem:[%s276_s0] sm:$0xff]  ;;  %v94_v3 = vld [vmem:[#allocation2 + $0x78] sm:$0xff]  ;;  %v28_v40 = vlaneseq }
   0x7   :  { %186 = vset.pattern.permute.xlu0 %v246_v0  ;;  %188 = vset.pattern.permute.xlu1 %v247_v1  ;;  %v110_v4 = vld [vmem:[#allocation2 + $0xf8] sm:$0xff]  ;;  %v55_v5 = vadd.s32 128, %v31_v2  ;;  %v93_v6 = vld [vmem:[#allocation2 + $0x70] sm:$0xff]  ;;  %v92_v8 = vld [vmem:[#allocation2 + $0x68] sm:$0xff]  ;;  %v43_v12 = vadd.s32 64, %v31_v2  ;;  %v67_v15 = vadd.s32 192, %v31_v2 }
   0x8   :  { %33 = vperm.xlu0 %186, %v31_v2   ;;  %111 = vmatpush.msra.mxu0 %v94_v3  ;;  %v109_v7 = vld [vmem:[#allocation2 + $0xf0] sm:$0xff]  ;;  %v108_v9 = vld [vmem:[#allocation2 + $0xe8] sm:$0xff]  ;;  %v91_v10 = vld [vmem:[#allocation2 + $0x60] sm:$0xff]  ;;  %v248_v17 = vmov 1   ;;  %v249_v20 = vmov 3   ;;  %v29_v41 = vand.u32 127, %v28_v40 }
   0x9   :  { %131 = vmatpush.msra.mxu1 %v110_v4  ;;  %57 = vperm.xlu1 %188, %v55_v5   ;;  %v107_v11 = vld [vmem:[#allocation2 + $0xe0] sm:$0xff]  ;;  %v90_v13 = vld [vmem:[#allocation2 + $0x58] sm:$0xff]  ;;  %v89_v16 = vld [vmem:[#allocation2 + $0x50] sm:$0xff]  ;;  %v250_v46 = vmov 0.0   ;;  %s251_s0 = smov [#allocation5]   ;;  %s159_s20 = sshll.u32 %s278_s2, 4  ;;  %s160_s20 = int_to_ptr.hbm [resolvable:$true] %s159_s20 }
   0xa   :  { %112 = vmatpush.msra.mxu0 %v93_v6  ;;  %v106_v14 = vld [vmem:[#allocation2 + $0xd8] sm:$0xff]  ;;  %v105_v18 = vld [vmem:[#allocation2 + $0xd0] sm:$0xff]  ;;  %v88_v19 = vld [vmem:[#allocation2 + $0x48] sm:$0xff]  ;;  %v30_v44 = vadd.s32 128, %v29_v41  ;;  %s157_s1 = sshll.u32 %s251_s0, 4  ;;  %s158_s1 = int_to_ptr.vmem [resolvable:$true] %s157_s1 }
   0xb   :  { %132 = vmatpush.msra.mxu1 %v109_v7  ;;  %v104_v21 = vld [vmem:[#allocation2 + $0xc8] sm:$0xff]  ;;  %v87_v22 = vld [vmem:[#allocation2 + $0x40] sm:$0xff]  ;;  %v86_v24 = vld [vmem:[#allocation2 + $0x38] sm:$0xff] }
   0xc   :  { %113 = vmatpush.msra.mxu0 %v92_v8  ;;  %v103_v23 = vld [vmem:[#allocation2 + $0xc0] sm:$0xff]  ;;  %v102_v25 = vld [vmem:[#allocation2 + $0xb8] sm:$0xff]  ;;  %v85_v26 = vld [vmem:[#allocation2 + $0x30] sm:$0xff] }
   0xd   :  { %133 = vmatpush.msra.mxu1 %v108_v9  ;;  %v101_v27 = vld [vmem:[#allocation2 + $0xb0] sm:$0xff]  ;;  %v84_v28 = vld [vmem:[#allocation2 + $0x28] sm:$0xff]  ;;  %v83_v30 = vld [vmem:[#allocation2 + $0x20] sm:$0xff] }
   0xe   :  { %114 = vmatpush.msra.mxu0 %v91_v10  ;;  %v100_v29 = vld [vmem:[#allocation2 + $0xa8] sm:$0xff]  ;;  %v99_v31 = vld [vmem:[#allocation2 + $0xa0] sm:$0xff]  ;;  %v82_v32 = vld [vmem:[#allocation2 + $0x18] sm:$0xff] }
   0xf   :  { %134 = vmatpush.msra.mxu1 %v107_v11  ;;  %v98_v33 = vld [vmem:[#allocation2 + $0x98] sm:$0xff]  ;;  %v81_v34 = vld [vmem:[#allocation2 + $0x10] sm:$0xff]  ;;  %v80_v36 = vld [vmem:[#allocation2 + $0x8] sm:$0xff] }
  0x10   :  { %187 = vset.pattern.permute.xlu0 %v248_v17  ;;  %115 = vmatpush.msra.mxu0 %v90_v13  ;;  %v97_v35 = vld [vmem:[#allocation2 + $0x90] sm:$0xff]  ;;  %v96_v37 = vld [vmem:[#allocation2 + $0x88] sm:$0xff]  ;;  %v79_v38 = vld [vmem:[#allocation2] sm:$0xff] }
  0x11   :  { %45 = vperm.xlu0 %187, %v43_v12   ;;  %135 = vmatpush.msra.mxu1 %v106_v14  ;;  %v95_v39 = vld [vmem:[#allocation2 + $0x80] sm:$0xff] }
  0x12   :  { %189 = vset.pattern.permute.xlu1 %v249_v20  ;;  %116 = vmatpush.msra.mxu0 %v89_v16 }
  0x13   :  { %69 = vperm.xlu1 %189, %v67_v15   ;;  %136 = vmatpush.msra.mxu1 %v105_v18 }
  0x14   :  { %117 = vmatpush.msra.mxu0 %v88_v19 }
  0x15   :  { %137 = vmatpush.msra.mxu1 %v104_v21 }
  0x16   :  { %118 = vmatpush.msra.mxu0 %v87_v22 }
  0x17   :  { %138 = vmatpush.msra.mxu1 %v103_v23 }
  0x18   :  { %119 = vmatpush.msra.mxu0 %v86_v24 }
  0x19   :  { %190 = vset.pattern.permute.xlu0 %v249_v20  ;;  %139 = vmatpush.msra.mxu1 %v102_v25 }
  0x1a   :  { %120 = vmatpush.msra.mxu0 %v85_v26 }
  0x1b   :  { %140 = vmatpush.msra.mxu1 %v101_v27 }
  0x1c   :  { %121 = vmatpush.msra.mxu0 %v84_v28 }
  0x1d   :  { %141 = vmatpush.msra.mxu1 %v100_v29 }
  0x1e   :  { %122 = vmatpush.msra.mxu0 %v83_v30 }
  0x1f   :  { %142 = vmatpush.msra.mxu1 %v99_v31 }
  0x20   :  { %123 = vmatpush.msra.mxu0 %v82_v32 }
  0x21   :  { %143 = vmatpush.msra.mxu1 %v98_v33 }
  0x22   :  { %124 = vmatpush.msra.mxu0 %v81_v34 }
  0x23   :  { %144 = vmatpush.msra.mxu1 %v97_v35 }
  0x24   :  { %125 = vmatpush.msra.mxu0 %v80_v36 }
  0x25   :  { %145 = vmatpush.msra.mxu1 %v96_v37 }
  0x26   :  { %126 = vmatpush.msra.mxu0 %v79_v38 }
  0x27   :  { %146 = vmatpush.msra.mxu1 %v95_v39 }
  0x7a   :  { %v34_v42 = vpop.permute.xlu0 %33 }
  0x7b   :  { %v58_v43 = vpop.permute.xlu1 %57  ;;  %vm35_vm0 = vcmp.eq.s32.totalorder %v29_v41, %v34_v42  ;;  %vm36_vm1 = vcmp.eq.s32.totalorder %v30_v44, %v34_v42 }
  0x7c   :  { %vm59_vm2 = vcmp.eq.s32.totalorder %v29_v41, %v58_v43  ;;  %vm60_vm3 = vcmp.eq.s32.totalorder %v30_v44, %v58_v43  ;;  %v169_v47 = vsel %vm35_vm0, 1.0, %v250_v46  ;;  %v170_v48 = vsel %vm36_vm1, 1.0, %v250_v46 }
  0x7d   :  { %v173_v54 = vsel %vm59_vm2, 1.0, %v250_v46  ;;  %v174_v55 = vsel %vm60_vm3, 1.0, %v250_v46 }
  0x83   :  { %v46_v45 = vpop.permute.xlu0 %45 }
  0x84   :  { %vm47_vm4 = vcmp.eq.s32.totalorder %v29_v41, %v46_v45  ;;  %vm48_vm5 = vcmp.eq.s32.totalorder %v30_v44, %v46_v45 }
  0x85   :  { %v171_v49 = vsel %vm47_vm4, 1.0, %v250_v46  ;;  %v172_v50 = vsel %vm48_vm5, 1.0, %v250_v46  ;;  %v70_v51 = vpop.permute.xlu1 %69 }
  0x86   :  { %v53_v52 = vadd.f32 %v171_v49, %v169_v47  ;;  %v54_v53 = vadd.f32 %v172_v50, %v170_v48  ;;  %vm71_vm6 = vcmp.eq.s32.totalorder %v29_v41, %v70_v51  ;;  %vm72_vm7 = vcmp.eq.s32.totalorder %v30_v44, %v70_v51 }
  0x87   :  { %v175_v56 = vsel %vm71_vm6, 1.0, %v250_v46  ;;  %v176_v57 = vsel %vm72_vm7, 1.0, %v250_v46 }
  0x88   :  { %v65_v58 = vadd.f32 %v173_v54, %v53_v52  ;;  %v66_v59 = vadd.f32 %v174_v55, %v54_v53 }
  0x8a   :  { %v77_v60 = vadd.f32 %v175_v56, %v65_v58  ;;  %v78_v61 = vadd.f32 %v176_v57, %v66_v59 }
  0x8c   :  { %127 = vmatmul.f32.vlgmr.msra.gmra.mxu0 %v77_v60  ;;  %147 = vmatmul.f32.vlgmr.msra.gmra.mxu1 %v78_v61 }
 0x109   :  { %v128_v62 = vpop.f32.mrf.mxu0  ;;  %v148_v63 = vpop.f32.mrf.mxu1 }
 0x10a   :  { %v149_v0 = vadd.f32 %v148_v63, %v128_v62 }
 0x10c   :  { %151 = vst [vmem:[#allocation5] sm:$0xff] %v149_v0 }
 0x10d   :  { %162 = dma.vmem_to_hbm [thread:$0]  %s158_s1, 128, %s160_s20, [#allocation4]  }
 0x10e   :  { %241 = dma.done.wait [#allocation4], 128  }
 0x10f   :  { %242 = vsyncadd [#allocation4], 4294967168 }
 0x110   :  { %167 = vsyncpa [#allocation3], 1 }
 0x111   :  { %168 = vsyncpa [#allocation4], 1 }

</bundles_post_ra>
